<compile_context>
chip_gen: v7x
topology: tpu7x:2x2x1
jax: 0.10.0
libtpu: 0.0.40
codegen_flags: <defaults>
</compile_context>

<pallas_src>
import jax
import jax.numpy as jnp
from jax.experimental import pallas as pl
from jax.experimental.pallas import tpu as pltpu


# ----------------------------- kernel helpers ------------------------------

def _log_softmax(x):
    m = jnp.max(x, axis=-1, keepdims=True)
    s = jnp.sum(jnp.exp(x - m), axis=-1, keepdims=True)
    return (x - m) - jnp.log(s)


def _full_spec(shape):
    n = len(shape)
    return pl.BlockSpec(shape, lambda i, _n=n: (0,) * _n)


# ------------------------------ fused kernel -------------------------------

def _debate_fused_kernel(zq_ref, jpred_ref, h_ref,
                         w1_ref, b1_ref, wf_ref, bf_ref, wq_ref, bq_ref,
                         probs_ref, topk_ref, loss_ref):
    B = zq_ref.shape[0]
    C = wq_ref.shape[1]            # n_class
    AB, _ = h_ref.shape
    A = AB // B                    # nagents
    inv_b = 1.0 / B                # hoisted 1/B constant (no divide in kernel)

    # --- z = adaptive_avg_pool2d(zq, (1,1)).squeeze(): mean over spatial ---
    z = jnp.mean(zq_ref[...], axis=-1)                              # (B, E)

    # --- cqlog_probs = log_softmax(z @ Wq + bq) ---
    cqlog = _log_softmax(
        jnp.dot(z, wq_ref[...], preferred_element_type=jnp.float32) + bq_ref[...])

    cls_iota = jax.lax.broadcasted_iota(jnp.int32, (B, C), 1)

    # --- cq_loss = F.nll_loss(cqlog_probs, jpred) (mean reduction) ---
    onehot_j = (cls_iota == jpred_ref[...]).astype(jnp.float32)
    cq_loss = -jnp.sum(cqlog * onehot_j) * inv_b

    # --- topk_predictions = topk(cqlog_probs, nagents)[1] (iterative argmax) ---
    work = cqlog
    agent_labels = []
    for k in range(A):
        m = jnp.max(work, axis=-1, keepdims=True)
        idx_k = jnp.min(jnp.where(work >= m, cls_iota, C),
                        axis=-1, keepdims=True)                     # (B, 1) int32
        agent_labels.append(idx_k)
        topk_ref[:, k:k + 1] = idx_k
        work = jnp.where(cls_iota == idx_k, -jnp.inf, work)

    # --- batched per-agent pihloss: ONE matmul path over all agents,
    #     classifier folded into Wf = w2 @ wq, bf = b2 @ wq + bq ---
    h_all = h_ref[...]                                              # (A*B, H)
    h1 = jnp.maximum(
        jnp.dot(h_all, w1_ref[...], preferred_element_type=jnp.float32)
        + b1_ref[...], 0.0)
    logp_a = _log_softmax(
        jnp.dot(h1, wf_ref[...], preferred_element_type=jnp.float32)
        + bf_ref[...])                                              # (A*B, C)

    total = cq_loss
    for ai in range(A):
        rows = logp_a[ai * B:(ai + 1) * B, :]
        onehot_a = (cls_iota == agent_labels[ai]).astype(jnp.float32)
        total = total - jnp.sum(rows * onehot_a) * inv_b

    # --- get_debate_outcome: mean over agents -> hprojection -> classifier ---
    d = h_all[0:B, :]
    for ai in range(1, A):
        d = d + h_all[ai * B:(ai + 1) * B, :]
    d = d * (1.0 / A)
    h1d = jnp.maximum(
        jnp.dot(d, w1_ref[...], preferred_element_type=jnp.float32)
        + b1_ref[...], 0.0)
    dlog = _log_softmax(
        jnp.dot(h1d, wf_ref[...], preferred_element_type=jnp.float32)
        + bf_ref[...])                                              # (B, C)

    # --- packed outputs: [cqlog_probs | dlog_prob] slab + (1,2) loss tile ---
    probs_ref[:, 0:C] = cqlog
    probs_ref[:, C:2 * C] = dlog
    loss_ref[0:1, 0:1] = cq_loss * jnp.ones((1, 1), jnp.float32)
    loss_ref[0:1, 1:2] = total * jnp.ones((1, 1), jnp.float32)


# ------------------------------ jitted wrapper ------------------------------

@jax.jit
def _debate_forward(zq, jpred, h_t, w1, b1, wf, bf, wq, bq):
    B, E, Hs, Ws = zq.shape
    A, _, H = h_t.shape
    C = wq.shape[1]

    zq_flat = zq.reshape(B, E, Hs * Ws).astype(jnp.float32)
    h_flat = h_t.reshape(A * B, H).astype(jnp.float32)
    jpred2 = jpred.astype(jnp.int32).reshape(B, 1)

    probs, topk, losses = pl.pallas_call(
        _debate_fused_kernel,
        out_shape=(
            jax.ShapeDtypeStruct((B, 2 * C), jnp.float32),   # [cqlog | dlog]
            jax.ShapeDtypeStruct((B, A), jnp.int32),         # topk predictions
            jax.ShapeDtypeStruct((1, 2), jnp.float32),       # [cq_loss, cq_loss_total]
        ),
        grid=(1,),
        in_specs=[
            _full_spec((B, E, Hs * Ws)),
            _full_spec((B, 1)),
            _full_spec((A * B, H)),
            _full_spec((H, H)), _full_spec((1, H)),
            _full_spec((H, C)), _full_spec((1, C)),
            _full_spec((E, C)), _full_spec((1, C)),
        ],
        out_specs=[
            _full_spec((B, 2 * C)),
            _full_spec((B, A)),
            _full_spec((1, 2)),
        ],
        compiler_params=pltpu.CompilerParams(
            dimension_semantics=("arbitrary",)),
    )(zq_flat, jpred2, h_flat,
      w1, b1.reshape(1, H), wf, bf.reshape(1, C), wq, bq.reshape(1, C))

    cqlog_probs = probs[:, :C]
    dlog_prob = probs[:, C:]
    dpred = jnp.argmax(dlog_prob, axis=1)

    return {
        "cqlog_probs": cqlog_probs,
        "cqloss": losses[0, 0],
        "cqloss_total": losses[0, 1],
        "topk_predictions": topk,
        "jpred": jpred,
        "dpred": dpred,
        "dlog_prob": dlog_prob,
    }


# ------------------------------ Debate module -------------------------------

class DebatePallas:
    """Implementable subset of `Debate.forward`, fused into one Pallas kernel."""

    def __init__(self, *, nagents, n_class, rnn_hidden, embedding_dim, key):
        assert nagents < n_class + 1
        self.nagents = nagents
        self.n_class = n_class
        self.rnn_hidden = rnn_hidden
        self.embedding_dim = embedding_dim
        ks = jax.random.split(key, 3)
        s = 0.02
        # hprojection: Linear(H, H) -> ReLU -> Linear(H, E)
        self.w1 = s * jax.random.normal(ks[0], (rnn_hidden, rnn_hidden), jnp.float32)
        self.b1 = jnp.zeros((rnn_hidden,), jnp.float32)
        self.w2 = s * jax.random.normal(ks[1], (rnn_hidden, embedding_dim), jnp.float32)
        self.b2 = jnp.zeros((embedding_dim,), jnp.float32)
        # quantized_classifier: Linear(E, n_class) (+ log_softmax)
        self.wq = s * jax.random.normal(ks[2], (embedding_dim, n_class), jnp.float32)
        self.bq = jnp.zeros((n_class,), jnp.float32)
        # Folded classifier for the hprojection -> quantized_classifier chain
        # (no nonlinearity between Linear(H,E) and Linear(E,n_class); hzq is
        # never used elsewhere in this forward, so folding is exact).
        self.wf = self.w2 @ self.wq                    # (H, n_class)
        self.bf = self.b2 @ self.wq + self.bq          # (n_class,)

    def forward(self, zq, jpred, h_t):
        """
        zq:    quantized features, NCHW (B, embedding_dim, H, W)
        jpred: judge predictions (B,) int32  (stand-in for argmax(judge(x)))
        h_t:   per-agent final hidden states, (nagents, B, rnn_hidden)
        """
        return _debate_forward(zq, jpred, h_t, self.w1, self.b1,
                               self.wf, self.bf, self.wq, self.bq)


# ---------------------------------- main ------------------------------------

if __name__ == "__main__":
    key = jax.random.PRNGKey(0)
    k_zq, k_h, k_y, k_params = jax.random.split(key, 4)

    B = 8            # batch
    E = 32           # embedding_dim / channels of zq
    H = W = 8        # spatial
    n_class = 16
    rnn_hidden = 32
    nagents = 2

    zq = jax.random.normal(k_zq, (B, E, H, W), jnp.float32)       # NCHW
    jpred = jax.random.randint(k_y, (B,), 0, n_class, jnp.int32)  # judge preds
    h_t = jax.random.normal(k_h, (nagents, B, rnn_hidden), jnp.float32)

    model = DebatePallas(nagents=nagents, n_class=n_class,
                         rnn_hidden=rnn_hidden, embedding_dim=E, key=k_params)

    logs = model.forward(zq, jpred, h_t)
    jax.block_until_ready(logs["dpred"])
    jax.block_until_ready(logs["cqloss_total"])

    assert logs["cqlog_probs"].shape == (B, n_class)
    assert logs["dlog_prob"].shape == (B, n_class)
    assert logs["topk_predictions"].shape == (B, nagents)
    assert logs["dpred"].shape == (B,)
    assert logs["cqloss"].shape == ()
    assert logs["cqloss_total"].shape == ()

    print("KERNEL_OK")
</pallas_src>

<mosaic_0001>
module attributes {stable_mosaic.version = 11 : i64} {
  func.func @_debate_fused_kernel(%arg0: i32, %arg1: memref<8x32x64xf32, #tpu.memory_space<vmem>>, %arg2: memref<8x1xi32, #tpu.memory_space<vmem>>, %arg3: memref<16x32xf32, #tpu.memory_space<vmem>>, %arg4: memref<32x32xf32, #tpu.memory_space<vmem>>, %arg5: memref<1x32xf32, #tpu.memory_space<vmem>>, %arg6: memref<32x16xf32, #tpu.memory_space<vmem>>, %arg7: memref<1x16xf32, #tpu.memory_space<vmem>>, %arg8: memref<32x16xf32, #tpu.memory_space<vmem>>, %arg9: memref<1x16xf32, #tpu.memory_space<vmem>>, %arg10: memref<8x32xf32, #tpu.memory_space<vmem>>, %arg11: memref<8x2xi32, #tpu.memory_space<vmem>>, %arg12: memref<1x2xf32, #tpu.memory_space<vmem>>) attributes {dimension_semantics = [#tpu.dimension_semantics<arbitrary>], iteration_bounds = array<i64: 1>, scalar_prefetch = 0 : i64, scratch_operands = 0 : i64, tpu.core_type = #tpu.core_type<tc>, window_params = [{pipeline_mode = #tpu.pipeline_mode<synchronous>, transform_indices = @transform_0, window_bounds = array<i64: 8, 32, 64>}, {pipeline_mode = #tpu.pipeline_mode<synchronous>, transform_indices = @transform_1, window_bounds = array<i64: 8, 1>}, {pipeline_mode = #tpu.pipeline_mode<synchronous>, transform_indices = @transform_2, window_bounds = array<i64: 16, 32>}, {pipeline_mode = #tpu.pipeline_mode<synchronous>, transform_indices = @transform_3, window_bounds = array<i64: 32, 32>}, {pipeline_mode = #tpu.pipeline_mode<synchronous>, transform_indices = @transform_4, window_bounds = array<i64: 1, 32>}, {pipeline_mode = #tpu.pipeline_mode<synchronous>, transform_indices = @transform_5, window_bounds = array<i64: 32, 16>}, {pipeline_mode = #tpu.pipeline_mode<synchronous>, transform_indices = @transform_6, window_bounds = array<i64: 1, 16>}, {pipeline_mode = #tpu.pipeline_mode<synchronous>, transform_indices = @transform_7, window_bounds = array<i64: 32, 16>}, {pipeline_mode = #tpu.pipeline_mode<synchronous>, transform_indices = @transform_8, window_bounds = array<i64: 1, 16>}, {pipeline_mode = #tpu.pipeline_mode<synchronous>, transform_indices = @transform_9, window_bounds = array<i64: 8, 32>}, {pipeline_mode = #tpu.pipeline_mode<synchronous>, transform_indices = @transform_10, window_bounds = array<i64: 8, 2>}, {pipeline_mode = #tpu.pipeline_mode<synchronous>, transform_indices = @transform_11, window_bounds = array<i64: 1, 2>}]} {
    %c0 = arith.constant 0 : index
    %c0_0 = arith.constant 0 : index
    %c0_1 = arith.constant 0 : index
    %0 = vector.load %arg1[%c0, %c0_0, %c0_1] : memref<8x32x64xf32, #tpu.memory_space<vmem>>, vector<8x32x64xf32>
    %cst = arith.constant dense<0.000000e+00> : vector<8x32xf32>
    %1 = vector.multi_reduction <add>, %0, %cst [2] : vector<8x32x64xf32> to vector<8x32xf32>
    %cst_2 = arith.constant 6.400000e+01 : f32
    %2 = vector.broadcast %cst_2 : f32 to vector<8x32xf32>
    %3 = arith.divf %1, %2 : vector<8x32xf32>
    %c0_3 = arith.constant 0 : index
    %c0_4 = arith.constant 0 : index
    %4 = vector.load %arg8[%c0_3, %c0_4] : memref<32x16xf32, #tpu.memory_space<vmem>>, vector<32x16xf32>
    %cst_5 = arith.constant dense<0.000000e+00> : vector<8x16xf32>
    %5 = tpu.matmul %3, %4, %cst_5 {dimension_numbers = #tpu.dot_dimension_numbers<[1], [0], [0], [1], [0, 0, 1, 1], [], []>} : vector<8x32xf32>, vector<32x16xf32>, vector<8x16xf32> -> vector<8x16xf32>
    %c0_6 = arith.constant 0 : index
    %c0_7 = arith.constant 0 : index
    %6 = vector.load %arg9[%c0_6, %c0_7] : memref<1x16xf32, #tpu.memory_space<vmem>>, vector<1x16xf32>
    %7 = vector.broadcast %6 : vector<1x16xf32> to vector<8x16xf32>
    %8 = arith.addf %5, %7 : vector<8x16xf32>
    %cst_8 = arith.constant dense<0xFF800000> : vector<8xf32>
    %9 = vector.multi_reduction <maximumf>, %8, %cst_8 [1] : vector<8x16xf32> to vector<8xf32>
    %10 = vector.shape_cast %9 : vector<8xf32> to vector<8x1xf32>
    %11 = vector.broadcast %10 : vector<8x1xf32> to vector<8x16xf32>
    %12 = arith.subf %8, %11 : vector<8x16xf32>
    %13 = math.exp %12 : vector<8x16xf32>
    %cst_9 = arith.constant dense<0.000000e+00> : vector<8xf32>
    %14 = vector.multi_reduction <add>, %13, %cst_9 [1] : vector<8x16xf32> to vector<8xf32>
    %15 = vector.shape_cast %14 : vector<8xf32> to vector<8x1xf32>
    %16 = vector.broadcast %10 : vector<8x1xf32> to vector<8x16xf32>
    %17 = arith.subf %8, %16 : vector<8x16xf32>
    %18 = math.log %15 : vector<8x1xf32>
    %19 = vector.broadcast %18 : vector<8x1xf32> to vector<8x16xf32>
    %20 = arith.subf %17, %19 : vector<8x16xf32>
    %21 = tpu.iota {dimensions = array<i32: 1>} : vector<8x16xi32>
    %c0_10 = arith.constant 0 : index
    %c0_11 = arith.constant 0 : index
    %22 = vector.load %arg2[%c0_10, %c0_11] : memref<8x1xi32, #tpu.memory_space<vmem>>, vector<8x1xi32>
    %23 = vector.broadcast %22 : vector<8x1xi32> to vector<8x16xi32>
    %24 = arith.cmpi eq, %21, %23 : vector<8x16xi32>
    %25 = arith.extui %24 : vector<8x16xi1> to vector<8x16xi32>
    %26 = arith.sitofp %25 : vector<8x16xi32> to vector<8x16xf32>
    %27 = arith.mulf %20, %26 : vector<8x16xf32>
    %28 = vector.shape_cast %27 : vector<8x16xf32> to vector<1x8x16xf32>
    %cst_12 = arith.constant dense<0.000000e+00> : vector<1xf32>
    %29 = vector.multi_reduction <add>, %28, %cst_12 [1, 2] : vector<1x8x16xf32> to vector<1xf32>
    %30 = vector.shape_cast %29 : vector<1xf32> to vector<1x1x1xf32>
    %31 = vector.extract %30[0, 0, 0] : f32 from vector<1x1x1xf32>
    %cst_13 = arith.constant 0.000000e+00 : f32
    %32 = arith.subf %cst_13, %31 : f32
    %cst_14 = arith.constant 1.250000e-01 : f32
    %33 = arith.mulf %32, %cst_14 : f32
    %cst_15 = arith.constant dense<0xFF800000> : vector<8xf32>
    %34 = vector.multi_reduction <maximumf>, %20, %cst_15 [1] : vector<8x16xf32> to vector<8xf32>
    %35 = vector.shape_cast %34 : vector<8xf32> to vector<8x1xf32>
    %36 = vector.broadcast %35 : vector<8x1xf32> to vector<8x16xf32>
    %37 = arith.cmpf oge, %20, %36 : vector<8x16xf32>
    %c16_i32 = arith.constant 16 : i32
    %38 = vector.broadcast %c16_i32 : i32 to vector<8x16xi32>
    %39 = arith.select %37, %21, %38 : vector<8x16xi1>, vector<8x16xi32>
    %cst_16 = arith.constant dense<2147483647> : vector<8xi32>
    %40 = vector.multi_reduction <minsi>, %39, %cst_16 [1] : vector<8x16xi32> to vector<8xi32>
    %41 = vector.shape_cast %40 : vector<8xi32> to vector<8x1xi32>
    %c0_17 = arith.constant 0 : index
    %c0_18 = arith.constant 0 : index
    %42 = vector.load %arg11[%c0_17, %c0_18] : memref<8x2xi32, #tpu.memory_space<vmem>>, vector<8x1xi32>
    tpu.vector_store %arg11[%c0_17, %c0_18], %41 {strides = array<i32>} : memref<8x2xi32, #tpu.memory_space<vmem>>, vector<8x1xi32>,
    %43 = vector.broadcast %41 : vector<8x1xi32> to vector<8x16xi32>
    %44 = arith.cmpi eq, %21, %43 : vector<8x16xi32>
    %cst_19 = arith.constant 0xFF800000 : f32
    %45 = vector.broadcast %cst_19 : f32 to vector<8x16xf32>
    %46 = arith.select %44, %45, %20 : vector<8x16xi1>, vector<8x16xf32>
    %cst_20 = arith.constant dense<0xFF800000> : vector<8xf32>
    %47 = vector.multi_reduction <maximumf>, %46, %cst_20 [1] : vector<8x16xf32> to vector<8xf32>
    %48 = vector.shape_cast %47 : vector<8xf32> to vector<8x1xf32>
    %49 = vector.broadcast %48 : vector<8x1xf32> to vector<8x16xf32>
    %50 = arith.cmpf oge, %46, %49 : vector<8x16xf32>
    %c16_i32_21 = arith.constant 16 : i32
    %51 = vector.broadcast %c16_i32_21 : i32 to vector<8x16xi32>
    %52 = arith.select %50, %21, %51 : vector<8x16xi1>, vector<8x16xi32>
    %cst_22 = arith.constant dense<2147483647> : vector<8xi32>
    %53 = vector.multi_reduction <minsi>, %52, %cst_22 [1] : vector<8x16xi32> to vector<8xi32>
    %54 = vector.shape_cast %53 : vector<8xi32> to vector<8x1xi32>
    %c0_23 = arith.constant 0 : index
    %c1 = arith.constant 1 : index
    %55 = vector.load %arg11[%c0_23, %c1] : memref<8x2xi32, #tpu.memory_space<vmem>>, vector<8x1xi32>
    tpu.vector_store %arg11[%c0_23, %c1], %54 {strides = array<i32>} : memref<8x2xi32, #tpu.memory_space<vmem>>, vector<8x1xi32>,
    %c0_24 = arith.constant 0 : index
    %c0_25 = arith.constant 0 : index
    %56 = vector.load %arg3[%c0_24, %c0_25] : memref<16x32xf32, #tpu.memory_space<vmem>>, vector<16x32xf32>
    %c0_26 = arith.constant 0 : index
    %c0_27 = arith.constant 0 : index
    %57 = vector.load %arg4[%c0_26, %c0_27] : memref<32x32xf32, #tpu.memory_space<vmem>>, vector<32x32xf32>
    %cst_28 = arith.constant dense<0.000000e+00> : vector<16x32xf32>
    %58 = tpu.matmul %56, %57, %cst_28 {dimension_numbers = #tpu.dot_dimension_numbers<[1], [0], [0], [1], [0, 0, 1, 1], [], []>} : vector<16x32xf32>, vector<32x32xf32>, vector<16x32xf32> -> vector<16x32xf32>
    %c0_29 = arith.constant 0 : index
    %c0_30 = arith.constant 0 : index
    %59 = vector.load %arg5[%c0_29, %c0_30] : memref<1x32xf32, #tpu.memory_space<vmem>>, vector<1x32xf32>
    %60 = vector.broadcast %59 : vector<1x32xf32> to vector<16x32xf32>
    %61 = arith.addf %58, %60 : vector<16x32xf32>
    %cst_31 = arith.constant 0.000000e+00 : f32
    %62 = vector.broadcast %cst_31 : f32 to vector<16x32xf32>
    %63 = arith.maximumf %61, %62 : vector<16x32xf32>
    %c0_32 = arith.constant 0 : index
    %c0_33 = arith.constant 0 : index
    %64 = vector.load %arg6[%c0_32, %c0_33] : memref<32x16xf32, #tpu.memory_space<vmem>>, vector<32x16xf32>
    %cst_34 = arith.constant dense<0.000000e+00> : vector<16x16xf32>
    %65 = tpu.matmul %63, %64, %cst_34 {dimension_numbers = #tpu.dot_dimension_numbers<[1], [0], [0], [1], [0, 0, 1, 1], [], []>} : vector<16x32xf32>, vector<32x16xf32>, vector<16x16xf32> -> vector<16x16xf32>
    %c0_35 = arith.constant 0 : index
    %c0_36 = arith.constant 0 : index
    %66 = vector.load %arg7[%c0_35, %c0_36] : memref<1x16xf32, #tpu.memory_space<vmem>>, vector<1x16xf32>
    %67 = vector.broadcast %66 : vector<1x16xf32> to vector<16x16xf32>
    %68 = arith.addf %65, %67 : vector<16x16xf32>
    %cst_37 = arith.constant dense<0xFF800000> : vector<16xf32>
    %69 = vector.multi_reduction <maximumf>, %68, %cst_37 [1] : vector<16x16xf32> to vector<16xf32>
    %70 = vector.shape_cast %69 : vector<16xf32> to vector<16x1xf32>
    %71 = vector.broadcast %70 : vector<16x1xf32> to vector<16x16xf32>
    %72 = arith.subf %68, %71 : vector<16x16xf32>
    %73 = math.exp %72 : vector<16x16xf32>
    %cst_38 = arith.constant dense<0.000000e+00> : vector<16xf32>
    %74 = vector.multi_reduction <add>, %73, %cst_38 [1] : vector<16x16xf32> to vector<16xf32>
    %75 = vector.shape_cast %74 : vector<16xf32> to vector<16x1xf32>
    %76 = vector.broadcast %70 : vector<16x1xf32> to vector<16x16xf32>
    %77 = arith.subf %68, %76 : vector<16x16xf32>
    %78 = math.log %75 : vector<16x1xf32>
    %79 = vector.broadcast %78 : vector<16x1xf32> to vector<16x16xf32>
    %80 = arith.subf %77, %79 : vector<16x16xf32>
    %81 = vector.extract_strided_slice %80 {offsets = [0, 0], sizes = [8, 16], strides = [1, 1]} : vector<16x16xf32> to vector<8x16xf32>
    %82 = vector.broadcast %41 : vector<8x1xi32> to vector<8x16xi32>
    %83 = arith.cmpi eq, %21, %82 : vector<8x16xi32>
    %84 = arith.extui %83 : vector<8x16xi1> to vector<8x16xi32>
    %85 = arith.sitofp %84 : vector<8x16xi32> to vector<8x16xf32>
    %86 = arith.mulf %81, %85 : vector<8x16xf32>
    %87 = vector.shape_cast %86 : vector<8x16xf32> to vector<1x8x16xf32>
    %cst_39 = arith.constant dense<0.000000e+00> : vector<1xf32>
    %88 = vector.multi_reduction <add>, %87, %cst_39 [1, 2] : vector<1x8x16xf32> to vector<1xf32>
    %89 = vector.shape_cast %88 : vector<1xf32> to vector<1x1x1xf32>
    %90 = vector.extract %89[0, 0, 0] : f32 from vector<1x1x1xf32>
    %cst_40 = arith.constant 1.250000e-01 : f32
    %91 = arith.mulf %90, %cst_40 : f32
    %92 = arith.subf %33, %91 : f32
    %93 = vector.extract_strided_slice %80 {offsets = [8, 0], sizes = [8, 16], strides = [1, 1]} : vector<16x16xf32> to vector<8x16xf32>
    %94 = vector.broadcast %54 : vector<8x1xi32> to vector<8x16xi32>
    %95 = arith.cmpi eq, %21, %94 : vector<8x16xi32>
    %96 = arith.extui %95 : vector<8x16xi1> to vector<8x16xi32>
    %97 = arith.sitofp %96 : vector<8x16xi32> to vector<8x16xf32>
    %98 = arith.mulf %93, %97 : vector<8x16xf32>
    %99 = vector.shape_cast %98 : vector<8x16xf32> to vector<1x8x16xf32>
    %cst_41 = arith.constant dense<0.000000e+00> : vector<1xf32>
    %100 = vector.multi_reduction <add>, %99, %cst_41 [1, 2] : vector<1x8x16xf32> to vector<1xf32>
    %101 = vector.shape_cast %100 : vector<1xf32> to vector<1x1x1xf32>
    %102 = vector.extract %101[0, 0, 0] : f32 from vector<1x1x1xf32>
    %cst_42 = arith.constant 1.250000e-01 : f32
    %103 = arith.mulf %102, %cst_42 : f32
    %104 = arith.subf %92, %103 : f32
    %105 = vector.extract_strided_slice %56 {offsets = [0, 0], sizes = [8, 32], strides = [1, 1]} : vector<16x32xf32> to vector<8x32xf32>
    %106 = vector.extract_strided_slice %56 {offsets = [8, 0], sizes = [8, 32], strides = [1, 1]} : vector<16x32xf32> to vector<8x32xf32>
    %107 = arith.addf %105, %106 : vector<8x32xf32>
    %cst_43 = arith.constant 5.000000e-01 : f32
    %108 = vector.broadcast %cst_43 : f32 to vector<8x32xf32>
    %109 = arith.mulf %107, %108 : vector<8x32xf32>
    %c0_44 = arith.constant 0 : index
    %c0_45 = arith.constant 0 : index
    %110 = vector.load %arg4[%c0_44, %c0_45] : memref<32x32xf32, #tpu.memory_space<vmem>>, vector<32x32xf32>
    %cst_46 = arith.constant dense<0.000000e+00> : vector<8x32xf32>
    %111 = tpu.matmul %109, %110, %cst_46 {dimension_numbers = #tpu.dot_dimension_numbers<[1], [0], [0], [1], [0, 0, 1, 1], [], []>} : vector<8x32xf32>, vector<32x32xf32>, vector<8x32xf32> -> vector<8x32xf32>
    %c0_47 = arith.constant 0 : index
    %c0_48 = arith.constant 0 : index
    %112 = vector.load %arg5[%c0_47, %c0_48] : memref<1x32xf32, #tpu.memory_space<vmem>>, vector<1x32xf32>
    %113 = vector.broadcast %112 : vector<1x32xf32> to vector<8x32xf32>
    %114 = arith.addf %111, %113 : vector<8x32xf32>
    %cst_49 = arith.constant 0.000000e+00 : f32
    %115 = vector.broadcast %cst_49 : f32 to vector<8x32xf32>
    %116 = arith.maximumf %114, %115 : vector<8x32xf32>
    %c0_50 = arith.constant 0 : index
    %c0_51 = arith.constant 0 : index
    %117 = vector.load %arg6[%c0_50, %c0_51] : memref<32x16xf32, #tpu.memory_space<vmem>>, vector<32x16xf32>
    %cst_52 = arith.constant dense<0.000000e+00> : vector<8x16xf32>
    %118 = tpu.matmul %116, %117, %cst_52 {dimension_numbers = #tpu.dot_dimension_numbers<[1], [0], [0], [1], [0, 0, 1, 1], [], []>} : vector<8x32xf32>, vector<32x16xf32>, vector<8x16xf32> -> vector<8x16xf32>
    %c0_53 = arith.constant 0 : index
    %c0_54 = arith.constant 0 : index
    %119 = vector.load %arg7[%c0_53, %c0_54] : memref<1x16xf32, #tpu.memory_space<vmem>>, vector<1x16xf32>
    %120 = vector.broadcast %119 : vector<1x16xf32> to vector<8x16xf32>
    %121 = arith.addf %118, %120 : vector<8x16xf32>
    %cst_55 = arith.constant dense<0xFF800000> : vector<8xf32>
    %122 = vector.multi_reduction <maximumf>, %121, %cst_55 [1] : vector<8x16xf32> to vector<8xf32>
    %123 = vector.shape_cast %122 : vector<8xf32> to vector<8x1xf32>
    %124 = vector.broadcast %123 : vector<8x1xf32> to vector<8x16xf32>
    %125 = arith.subf %121, %124 : vector<8x16xf32>
    %126 = math.exp %125 : vector<8x16xf32>
    %cst_56 = arith.constant dense<0.000000e+00> : vector<8xf32>
    %127 = vector.multi_reduction <add>, %126, %cst_56 [1] : vector<8x16xf32> to vector<8xf32>
    %128 = vector.shape_cast %127 : vector<8xf32> to vector<8x1xf32>
    %129 = vector.broadcast %123 : vector<8x1xf32> to vector<8x16xf32>
    %130 = arith.subf %121, %129 : vector<8x16xf32>
    %131 = math.log %128 : vector<8x1xf32>
    %132 = vector.broadcast %131 : vector<8x1xf32> to vector<8x16xf32>
    %133 = arith.subf %130, %132 : vector<8x16xf32>
    %c0_57 = arith.constant 0 : index
    %c0_58 = arith.constant 0 : index
    %134 = vector.load %arg10[%c0_57, %c0_58] : memref<8x32xf32, #tpu.memory_space<vmem>>, vector<8x16xf32>
    tpu.vector_store %arg10[%c0_57, %c0_58], %20 {strides = array<i32>} : memref<8x32xf32, #tpu.memory_space<vmem>>, vector<8x16xf32>,
    %c0_59 = arith.constant 0 : index
    %c16 = arith.constant 16 : index
    %135 = vector.load %arg10[%c0_59, %c16] : memref<8x32xf32, #tpu.memory_space<vmem>>, vector<8x16xf32>
    tpu.vector_store %arg10[%c0_59, %c16], %133 {strides = array<i32>} : memref<8x32xf32, #tpu.memory_space<vmem>>, vector<8x16xf32>,
    %cst_60 = arith.constant 1.000000e+00 : f32
    %136 = vector.broadcast %cst_60 : f32 to vector<1x1xf32>
    %137 = vector.broadcast %33 : f32 to vector<1x1xf32>
    %138 = arith.mulf %137, %136 : vector<1x1xf32>
    %c0_61 = arith.constant 0 : index
    %c0_62 = arith.constant 0 : index
    %139 = vector.load %arg12[%c0_61, %c0_62] : memref<1x2xf32, #tpu.memory_space<vmem>>, vector<1x1xf32>
    tpu.vector_store %arg12[%c0_61, %c0_62], %138 {strides = array<i32>} : memref<1x2xf32, #tpu.memory_space<vmem>>, vector<1x1xf32>,
    %cst_63 = arith.constant 1.000000e+00 : f32
    %140 = vector.broadcast %cst_63 : f32 to vector<1x1xf32>
    %141 = vector.broadcast %104 : f32 to vector<1x1xf32>
    %142 = arith.mulf %141, %140 : vector<1x1xf32>
    %c0_64 = arith.constant 0 : index
    %c1_65 = arith.constant 1 : index
    %143 = vector.load %arg12[%c0_64, %c1_65] : memref<1x2xf32, #tpu.memory_space<vmem>>, vector<1x1xf32>
    tpu.vector_store %arg12[%c0_64, %c1_65], %142 {strides = array<i32>} : memref<1x2xf32, #tpu.memory_space<vmem>>, vector<1x1xf32>,
    return
  }
  func.func @transform_0(%arg0: i32) -> (i32, i32, i32) {
    %c0_i32 = arith.constant 0 : i32
    %c0_i32_0 = arith.constant 0 : i32
    %c0_i32_1 = arith.constant 0 : i32
    %c0_i32_2 = arith.constant 0 : i32
    return %c0_i32, %c0_i32_0, %c0_i32_1 : i32, i32, i32
  }
  func.func @transform_1(%arg0: i32) -> (i32, i32) {
    %c0_i32 = arith.constant 0 : i32
    %c0_i32_0 = arith.constant 0 : i32
    %c0_i32_1 = arith.constant 0 : i32
    return %c0_i32, %c0_i32_0 : i32, i32
  }
  func.func @transform_2(%arg0: i32) -> (i32, i32) {
    %c0_i32 = arith.constant 0 : i32
    %c0_i32_0 = arith.constant 0 : i32
    %c0_i32_1 = arith.constant 0 : i32
    return %c0_i32, %c0_i32_0 : i32, i32
  }
  func.func @transform_3(%arg0: i32) -> (i32, i32) {
    %c0_i32 = arith.constant 0 : i32
    %c0_i32_0 = arith.constant 0 : i32
    %c0_i32_1 = arith.constant 0 : i32
    return %c0_i32, %c0_i32_0 : i32, i32
  }
  func.func @transform_4(%arg0: i32) -> (i32, i32) {
    %c0_i32 = arith.constant 0 : i32
    %c0_i32_0 = arith.constant 0 : i32
    %c0_i32_1 = arith.constant 0 : i32
    return %c0_i32, %c0_i32_0 : i32, i32
  }
  func.func @transform_5(%arg0: i32) -> (i32, i32) {
    %c0_i32 = arith.constant 0 : i32
    %c0_i32_0 = arith.constant 0 : i32
    %c0_i32_1 = arith.constant 0 : i32
    return %c0_i32, %c0_i32_0 : i32, i32
  }
  func.func @transform_6(%arg0: i32) -> (i32, i32) {
    %c0_i32 = arith.constant 0 : i32
    %c0_i32_0 = arith.constant 0 : i32
    %c0_i32_1 = arith.constant 0 : i32
    return %c0_i32, %c0_i32_0 : i32, i32
  }
  func.func @transform_7(%arg0: i32) -> (i32, i32) {
    %c0_i32 = arith.constant 0 : i32
    %c0_i32_0 = arith.constant 0 : i32
    %c0_i32_1 = arith.constant 0 : i32
    return %c0_i32, %c0_i32_0 : i32, i32
  }
  func.func @transform_8(%arg0: i32) -> (i32, i32) {
    %c0_i32 = arith.constant 0 : i32
    %c0_i32_0 = arith.constant 0 : i32
    %c0_i32_1 = arith.constant 0 : i32
    return %c0_i32, %c0_i32_0 : i32, i32
  }
  func.func @transform_9(%arg0: i32) -> (i32, i32) {
    %c0_i32 = arith.constant 0 : i32
    %c0_i32_0 = arith.constant 0 : i32
    %c0_i32_1 = arith.constant 0 : i32
    return %c0_i32, %c0_i32_0 : i32, i32
  }
  func.func @transform_10(%arg0: i32) -> (i32, i32) {
    %c0_i32 = arith.constant 0 : i32
    %c0_i32_0 = arith.constant 0 : i32
    %c0_i32_1 = arith.constant 0 : i32
    return %c0_i32, %c0_i32_0 : i32, i32
  }
  func.func @transform_11(%arg0: i32) -> (i32, i32) {
    %c0_i32 = arith.constant 0 : i32
    %c0_i32_0 = arith.constant 0 : i32
    %c0_i32_1 = arith.constant 0 : i32
    return %c0_i32, %c0_i32_0 : i32, i32
  }
}

</mosaic_0001>

<bundles_post_ra>
// kernel: _debate_forward.1
= control target key start
LH: loop header
LB: loop body
LE: loop exit
PB: predicated region body
PF: predicated region fallthrough
CT: control target
= control target key end

     0   :  { %vm67_vm0 = vcmask 523264   ;;  %vm1154_vm1 = vmmov 0   ;;  %vm251_vm2 = vcmask 130112   ;;  %vm258_vm3 = vcmask 195712   ;;  %s1157_s17 = smov 16   ;;  %s1560_s0 = inlined_call_operand.vmem [shape: f32[8,32,64], index: 0, kind: input, shape index: {}]   ;;  %s1561_s7 = inlined_call_operand.vmem [shape: f32[32,16], index: 7, kind: input, shape index: {}]   ;;  %s1562_s8 = inlined_call_operand.vmem [shape: f32[1,16], index: 8, kind: input, shape index: {}]   ;;  %s1563_s3 = inlined_call_operand.vmem [shape: f32[32,32], index: 3, kind: input, shape index: {}]   ;;  %s1564_s2 = inlined_call_operand.vmem [shape: f32[16,32], index: 2, kind: input, shape index: {}]   ;;  %s1565_s9 = inlined_call_operand.vmem [shape: f32[8,32], index: 9, kind: output, shape index: {0}]   ;;  %s1566_s5 = inlined_call_operand.vmem [shape: f32[32,16], index: 5, kind: input, shape index: {}]   ;;  %s1567_s4 = inlined_call_operand.vmem [shape: f32[1,32], index: 4, kind: input, shape index: {}]   ;;  %s1568_s6 = inlined_call_operand.vmem [shape: f32[1,16], index: 6, kind: input, shape index: {}]   ;;  %s1569_s10 = inlined_call_operand.vmem [shape: s32[8,2], index: 10, kind: output, shape index: {1}]   ;;  %s1570_s1 = inlined_call_operand.vmem [shape: s32[8,1], index: 1, kind: input, shape index: {}]   ;;  %s1571_s11 = inlined_call_operand.vmem [shape: f32[1,2], index: 11, kind: output, shape index: {2}]  }
   0x1   :  { %v39_v0 = vld [vmem:[%s1560_s0 + $0x20] sm:$0xff]  ;;  %v40_v2 = vld [vmem:[%s1560_s0 + $0x28] sm:$0xff]  ;;  %v41_v8 = vld [vmem:[%s1560_s0 + $0x30] sm:$0xff]  ;;  %vm265_vm4 = vcmask 261312   ;;  %vm400_vm5 = vcmask 1041409   ;;  %vm402_vm6 = vcmask 1042434  }
   0x2   :  { %v35_v1 = vld [vmem:[%s1560_s0] sm:$0xff]  ;;  %v80_v3 = vsel %vm67_vm0, %v39_v0, 0.0  ;;  %v36_v5 = vld [vmem:[%s1560_s0 + $0x8] sm:$0xff]  ;;  %v83_v6 = vsel %vm67_vm0, %v40_v2, 0.0  ;;  %v37_v9 = vld [vmem:[%s1560_s0 + $0x10] sm:$0xff]  ;;  %v86_v10 = vsel %vm67_vm0, %v41_v8, 0.0 }
   0x3   :  { %v68_v4 = vsel %vm67_vm0, %v35_v1, 0.0  ;;  %81 = vadd.xlane.f32.xlu1 %v80_v3  ;;  %v71_v7 = vsel %vm67_vm0, %v36_v5, 0.0  ;;  %v74_v11 = vsel %vm67_vm0, %v37_v9, 0.0  ;;  %v44_v12 = vld [vmem:[%s1560_s0 + $0x48] sm:$0xff]  ;;  %v43_v13 = vld [vmem:[%s1560_s0 + $0x40] sm:$0xff]  ;;  %v42_v16 = vld [vmem:[%s1560_s0 + $0x38] sm:$0xff] }
   0x4   :  { %69 = vadd.xlane.f32.xlu0 %v68_v4  ;;  %v95_v14 = vsel %vm67_vm0, %v44_v12, 0.0  ;;  %v92_v15 = vsel %vm67_vm0, %v43_v13, 0.0  ;;  %v38_v17 = vld [vmem:[%s1560_s0 + $0x18] sm:$0xff]  ;;  %v89_v18 = vsel %vm67_vm0, %v42_v16, 0.0  ;;  %v47_v20 = vld [vmem:[%s1560_s0 + $0x60] sm:$0xff]  ;;  %v45_v21 = vld [vmem:[%s1560_s0 + $0x50] sm:$0xff] }
   0x5   :  { %v77_v19 = vsel %vm67_vm0, %v38_v17, 0.0  ;;  %v104_v22 = vsel %vm67_vm0, %v47_v20, 0.0  ;;  %v98_v23 = vsel %vm67_vm0, %v45_v21, 0.0  ;;  %v46_v24 = vld [vmem:[%s1560_s0 + $0x58] sm:$0xff]  ;;  %v48_v25 = vld [vmem:[%s1560_s0 + $0x68] sm:$0xff]  ;;  %v51_v28 = vld [vmem:[%s1560_s0 + $0x80] sm:$0xff] }
   0x6   :  { %v101_v26 = vsel %vm67_vm0, %v46_v24, 0.0  ;;  %v107_v27 = vsel %vm67_vm0, %v48_v25, 0.0  ;;  %v49_v29 = vld [vmem:[%s1560_s0 + $0x70] sm:$0xff]  ;;  %v116_v30 = vsel %vm67_vm0, %v51_v28, 0.0  ;;  %v50_v32 = vld [vmem:[%s1560_s0 + $0x78] sm:$0xff]  ;;  %v52_v33 = vld [vmem:[%s1560_s0 + $0x88] sm:$0xff] }
   0x7   :  { %84 = vadd.xlane.f32.xlu1 %v83_v6  ;;  %v110_v31 = vsel %vm67_vm0, %v49_v29, 0.0  ;;  %v113_v34 = vsel %vm67_vm0, %v50_v32, 0.0  ;;  %v119_v35 = vsel %vm67_vm0, %v52_v33, 0.0  ;;  %v55_v36 = vld [vmem:[%s1560_s0 + $0xa0] sm:$0xff]  ;;  %v53_v37 = vld [vmem:[%s1560_s0 + $0x90] sm:$0xff]  ;;  %v54_v40 = vld [vmem:[%s1560_s0 + $0x98] sm:$0xff] }
   0x8   :  { %72 = vadd.xlane.f32.xlu0 %v71_v7  ;;  %v128_v38 = vsel %vm67_vm0, %v55_v36, 0.0  ;;  %v122_v39 = vsel %vm67_vm0, %v53_v37, 0.0  ;;  %v56_v41 = vld [vmem:[%s1560_s0 + $0xa8] sm:$0xff]  ;;  %v125_v42 = vsel %vm67_vm0, %v54_v40, 0.0  ;;  %v59_v44 = vld [vmem:[%s1560_s0 + $0xc0] sm:$0xff]  ;;  %v57_v45 = vld [vmem:[%s1560_s0 + $0xb0] sm:$0xff] }
   0x9   :  { %v131_v43 = vsel %vm67_vm0, %v56_v41, 0.0  ;;  %v140_v46 = vsel %vm67_vm0, %v59_v44, 0.0  ;;  %v134_v47 = vsel %vm67_vm0, %v57_v45, 0.0  ;;  %v58_v48 = vld [vmem:[%s1560_s0 + $0xb8] sm:$0xff]  ;;  %v60_v49 = vld [vmem:[%s1560_s0 + $0xc8] sm:$0xff]  ;;  %v63_v52 = vld [vmem:[%s1560_s0 + $0xe0] sm:$0xff] }
   0xa   :  { %v137_v50 = vsel %vm67_vm0, %v58_v48, 0.0  ;;  %v143_v51 = vsel %vm67_vm0, %v60_v49, 0.0  ;;  %v61_v53 = vld [vmem:[%s1560_s0 + $0xd0] sm:$0xff]  ;;  %v152_v54 = vsel %vm67_vm0, %v63_v52, 0.0  ;;  %v62_v56 = vld [vmem:[%s1560_s0 + $0xd8] sm:$0xff]  ;;  %v64_v57 = vld [vmem:[%s1560_s0 + $0xe8] sm:$0xff] }
   0xb   :  { %87 = vadd.xlane.f32.xlu1 %v86_v10  ;;  %v146_v55 = vsel %vm67_vm0, %v61_v53, 0.0  ;;  %v149_v58 = vsel %vm67_vm0, %v62_v56, 0.0  ;;  %v155_v59 = vsel %vm67_vm0, %v64_v57, 0.0  ;;  %v65_v60 = vld [vmem:[%s1560_s0 + $0xf0] sm:$0xff]  ;;  %v66_v61 = vld [vmem:[%s1560_s0 + $0xf8] sm:$0xff]  ;;  %v197_v0 = vld [vmem:[%s1561_s7] sm:$0xff] }
   0xc   :  { %75 = vadd.xlane.f32.xlu0 %v74_v11  ;;  %v158_v62 = vsel %vm67_vm0, %v65_v60, 0.0  ;;  %v161_v63 = vsel %vm67_vm0, %v66_v61, 0.0  ;;  %v198_v1 = vld [vmem:[%s1561_s7 + $0x8] sm:$0xff]  ;;  %v1153_v3 = vmov 0.0|0.0   ;;  %v199_v4 = vld [vmem:[%s1561_s7 + $0x10] sm:$0xff]  ;;  %v200_v5 = vld [vmem:[%s1561_s7 + $0x18] sm:$0xff] }
   0xd   :  { %v1091_v2 = vpack.c.bf16 %v198_v1, %v197_v0  ;;  %1090 = vmatprep.subr.bf16.mxu0 %v1153_v3  ;;  %v1094_v6 = vpack.c.bf16 %v200_v5, %v199_v4  ;;  %v1155_v7 = vmov 0.0   ;;  %vm404_vm7 = vcmask 1043459  }
   0xe   :  { %1043 = vmatprep.mubr.msk.f32.mxu0 %vm1154_vm1, %v1155_v7  ;;  %vm406_vm8 = vcmask 1044484   ;;  %vm408_vm9 = vcmask 1045509   ;;  %vm410_vm10 = vcmask 1046534   ;;  %vm412_vm11 = vcmask 1047559  }
   0xf   :  { %96 = vadd.xlane.f32.xlu1 %v95_v14  ;;  %1092 = vmatpush3.bf16.msra.mxu0 %v1091_v2  ;;  %vm414_vm12 = vcmask 261120   ;;  %vm487_vm13 = vcmask 130048   ;;  %vm540_vm0 = vcmask 7168  }
  0x10   :  { %93 = vadd.xlane.f32.xlu0 %v92_v15  ;;  %1093 = vmatprep.subr.bf16.mxu0 %v1153_v3 }
  0x13   :  { %90 = vadd.xlane.f32.xlu1 %v89_v18  ;;  %1095 = vmatpush3.bf16.msra.mxu0 %v1094_v6 }
  0x14   :  { %78 = vadd.xlane.f32.xlu0 %v77_v19 }
  0x17   :  { %105 = vadd.xlane.f32.xlu1 %v104_v22  ;;  %v240_v22 = vlaneseq }
  0x18   :  { %99 = vadd.xlane.f32.xlu0 %v98_v23 }
  0x19   :  { %v1364_v25 = vand.u32 127, %v240_v22 }
  0x1b   :  { %102 = vadd.xlane.f32.xlu1 %v101_v26  ;;  %v243_v26 = vshrl.u32 %v240_v22, 7  ;;  %v246_v29 = vadd.s32 4294967288, %v1364_v25 }
  0x1c   :  { %108 = vadd.xlane.f32.xlu0 %v107_v27 }
  0x1d   :  { %v1370_v32 = vsub.s32 %v1364_v25, %v243_v26  ;;  %v1374_v36 = vsub.s32 %v246_v29, %v243_v26 }
  0x1f   :  { %117 = vadd.xlane.f32.xlu1 %v116_v30  ;;  %v253_v30 = vadd.s32 4294967280, %v1364_v25 }
  0x20   :  { %111 = vadd.xlane.f32.xlu0 %v110_v31  ;;  %v260_v31 = vadd.s32 4294967272, %v1364_v25 }
  0x23   :  { %114 = vadd.xlane.f32.xlu1 %v113_v34 }
  0x24   :  { %120 = vadd.xlane.f32.xlu0 %v119_v35 }
  0x27   :  { %129 = vadd.xlane.f32.xlu1 %v128_v38 }
  0x28   :  { %123 = vadd.xlane.f32.xlu0 %v122_v39  ;;  %v1376_v39 = vsub.s32 %v253_v30, %v243_v26 }
  0x2b   :  { %126 = vadd.xlane.f32.xlu1 %v125_v42 }
  0x2c   :  { %132 = vadd.xlane.f32.xlu0 %v131_v43  ;;  %v1378_v43 = vsub.s32 %v260_v31, %v243_v26 }
  0x2f   :  { %141 = vadd.xlane.f32.xlu1 %v140_v46 }
  0x30   :  { %135 = vadd.xlane.f32.xlu0 %v134_v47 }
  0x33   :  { %138 = vadd.xlane.f32.xlu1 %v137_v50 }
  0x34   :  { %144 = vadd.xlane.f32.xlu0 %v143_v51 }
  0x37   :  { %153 = vadd.xlane.f32.xlu1 %v152_v54 }
  0x38   :  { %147 = vadd.xlane.f32.xlu0 %v146_v55 }
  0x3b   :  { %150 = vadd.xlane.f32.xlu1 %v149_v58 }
  0x3c   :  { %156 = vadd.xlane.f32.xlu0 %v155_v59 }
  0x3f   :  { %162 = vadd.xlane.f32.xlu1 %v161_v63 }
  0x40   :  { %159 = vadd.xlane.f32.xlu0 %v158_v62 }
  0x90   :  { %v82_v8 = vpop.xlane.xlu1 %81 }
  0x91   :  { %v70_v9 = vpop.xlane.xlu0 %69  ;;  %v169_v35 = vmul.f32 0.015625, %v82_v8 }
  0x92   :  { %v165_v42 = vmul.f32 0.015625, %v70_v9 }
  0x93   :  { %v270_v48 = vrot.slane %v169_v35, %v1370_v32 }
  0x94   :  { %v85_v10 = vpop.xlane.xlu1 %84  ;;  %v245_v55 = vrot.slane %v165_v42, %v1370_v32 }
  0x95   :  { %v73_v11 = vpop.xlane.xlu0 %72  ;;  %v170_v37 = vmul.f32 0.015625, %v85_v10 }
  0x96   :  { %v166_v38 = vmul.f32 0.015625, %v73_v11 }
  0x97   :  { %v274_v49 = vrot.slane %v170_v37, %v1374_v36 }
  0x98   :  { %v88_v12 = vpop.xlane.xlu1 %87  ;;  %v250_v50 = vrot.slane %v166_v38, %v1374_v36 }
  0x99   :  { %v76_v13 = vpop.xlane.xlu0 %75  ;;  %v171_v40 = vmul.f32 0.015625, %v88_v12  ;;  %v275_v61 = vsel %vm251_vm2, %v274_v49, %v270_v48 }
  0x9a   :  { %v167_v41 = vmul.f32 0.015625, %v76_v13  ;;  %v252_v62 = vsel %vm251_vm2, %v250_v50, %v245_v55 }
  0x9b   :  { %v279_v51 = vrot.slane %v171_v40, %v1376_v39 }
  0x9c   :  { %v97_v14 = vpop.xlane.xlu1 %96  ;;  %v257_v52 = vrot.slane %v167_v41, %v1376_v39 }
  0x9d   :  { %v94_v15 = vpop.xlane.xlu0 %93  ;;  %v174_v53 = vmul.f32 0.015625, %v97_v14  ;;  %v280_v0 = vsel %vm258_vm3, %v279_v51, %v275_v61 }
  0x9e   :  { %v173_v54 = vmul.f32 0.015625, %v94_v15  ;;  %v259_v1 = vsel %vm258_vm3, %v257_v52, %v252_v62 }
  0x9f   :  { %v293_v2 = vrot.slane %v174_v53, %v1374_v36 }
  0xa0   :  { %v91_v16 = vpop.xlane.xlu1 %90  ;;  %v289_v4 = vrot.slane %v173_v54, %v1370_v32 }
  0xa1   :  { %v79_v17 = vpop.xlane.xlu0 %78  ;;  %v172_v44 = vmul.f32 0.015625, %v91_v16 }
  0xa2   :  { %v168_v45 = vmul.f32 0.015625, %v79_v17  ;;  %v294_v15 = vsel %vm251_vm2, %v293_v2, %v289_v4 }
  0xa3   :  { %v284_v56 = vrot.slane %v172_v44, %v1378_v43 }
  0xa4   :  { %v106_v18 = vpop.xlane.xlu1 %105  ;;  %v264_v57 = vrot.slane %v168_v45, %v1378_v43 }
  0xa5   :  { %v100_v19 = vpop.xlane.xlu0 %99  ;;  %v285_v5 = vsel %vm265_vm4, %v284_v56, %v280_v0  ;;  %v177_v13 = vmul.f32 0.015625, %v106_v18 }
  0xa6   :  { %v175_v58 = vmul.f32 0.015625, %v100_v19  ;;  %v266_v6 = vsel %vm265_vm4, %v264_v57, %v259_v1 }
  0xa7   :  { %v401_v16 = vsel %vm400_vm5, %v285_v5, %v266_v6  ;;  %v308_v35 = vrot.slane %v177_v13, %v1370_v32  ;;  %vm564_vm5 = vcmask 15368  }
  0xa8   :  { %v103_v20 = vpop.xlane.xlu1 %102  ;;  %v298_v8 = vrot.slane %v175_v58, %v1376_v39 }
  0xa9   :  { %v109_v21 = vpop.xlane.xlu0 %108  ;;  %v176_v63 = vmul.f32 0.015625, %v103_v20 }
  0xaa   :  { %v178_v9 = vmul.f32 0.015625, %v109_v21  ;;  %v299_v19 = vsel %vm258_vm3, %v298_v8, %v294_v15 }
  0xab   :  { %v303_v14 = vrot.slane %v176_v63, %v1378_v43 }
  0xac   :  { %v118_v23 = vpop.xlane.xlu1 %117  ;;  %v312_v20 = vrot.slane %v178_v9, %v1374_v36 }
  0xad   :  { %v1362_v24 = vpop.xlane.xlu0 %111  ;;  %v181_v17 = vmul.f32 0.015625, %v118_v23  ;;  %v304_v23 = vsel %vm265_vm4, %v303_v14, %v299_v19 }
  0xae   :  { %v179_v22 = vmul.f32 0.015625, %v1362_v24 }
  0xaf   :  { %v327_v40 = vrot.slane %v181_v17, %v1370_v32 }
  0xb0   :  { %v115_v27 = vpop.xlane.xlu1 %114  ;;  %v317_v42 = vrot.slane %v179_v22, %v1376_v39 }
  0xb1   :  { %v121_v28 = vpop.xlane.xlu0 %120  ;;  %v180_v21 = vmul.f32 0.015625, %v115_v27  ;;  %v313_v27 = vsel %vm251_vm2, %v312_v20, %v308_v35  ;;  %v569_v35 = vld [vmem:[%s1563_s3 + $0x8] sm:$0xff] }
  0xb2   :  { %v182_v10 = vmul.f32 0.015625, %v121_v28 }
  0xb4   :  { %v1372_v33 = vpop.xlane.xlu1 %129  ;;  %v331_v28 = vrot.slane %v182_v10, %v1374_v36 }
  0xb5   :  { %v124_v34 = vpop.xlane.xlu0 %123  ;;  %v185_v24 = vmul.f32 0.015625, %v1372_v33 }
  0xb6   :  { %v183_v26 = vmul.f32 0.015625, %v124_v34 }
  0xb7   :  { %v346_v55 = vrot.slane %v185_v24, %v1370_v32 }
  0xb8   :  { %v127_v46 = vpop.xlane.xlu1 %126  ;;  %v336_v44 = vrot.slane %v183_v26, %v1376_v39 }
  0xb9   :  { %v133_v47 = vpop.xlane.xlu0 %132  ;;  %v184_v18 = vmul.f32 0.015625, %v127_v46  ;;  %v322_v46 = vrot.slane %v180_v21, %v1378_v43 }
  0xba   :  { %v186_v29 = vmul.f32 0.015625, %v133_v47  ;;  %v332_v47 = vsel %vm251_vm2, %v331_v28, %v327_v40  ;;  %v566_v40 = vld [vmem:[%s1564_s2] sm:$0xff] }
  0xbb   :  { %v341_v48 = vrot.slane %v184_v18, %v1378_v43  ;;  %1054 = vmatprep.mubr.msk.f32.mxu1 %vm414_vm12, %v566_v40 }
  0xbc   :  { %v142_v59 = vpop.xlane.xlu1 %141  ;;  %v350_v49 = vrot.slane %v186_v29, %v1374_v36 }
  0xbd   :  { %v136_v60 = vpop.xlane.xlu0 %135  ;;  %v189_v45 = vmul.f32 0.015625, %v142_v59  ;;  %v318_v59 = vsel %vm258_vm3, %v317_v42, %v313_v27 }
  0xbe   :  { %v187_v37 = vmul.f32 0.015625, %v136_v60  ;;  %v337_v60 = vsel %vm258_vm3, %v336_v44, %v332_v47  ;;  %v323_v63 = vsel %vm265_vm4, %v322_v46, %v318_v59  ;;  %v351_v1 = vsel %vm251_vm2, %v350_v49, %v346_v55  ;;  %v998_v55 = vld [vmem:[%s1567_s4] ss:$0 sm:$0xff]  ;;  %v664_v59 = vld [vmem:[%s1566_s5 + $0x10] sm:$0xff] }
  0xbf   :  { %v365_v61 = vrot.slane %v189_v45, %v1370_v32  ;;  %v342_v0 = vsel %vm265_vm4, %v341_v48, %v337_v60  ;;  %v665_v60 = vld [vmem:[%s1566_s5 + $0x18] sm:$0xff] }
  0xc0   :  { %v139_v11 = vpop.xlane.xlu1 %138  ;;  %v355_v51 = vrot.slane %v187_v37, %v1376_v39 }
  0xc1   :  { %v145_v12 = vpop.xlane.xlu0 %144  ;;  %v188_v34 = vmul.f32 0.015625, %v139_v11  ;;  %v403_v11 = vsel %vm402_vm6, %v304_v23, %v401_v16  ;;  %v570_v23 = vld [vmem:[%s1563_s3 + $0x10] sm:$0xff] }
  0xc2   :  { %v190_v38 = vmul.f32 0.015625, %v145_v12  ;;  %v356_v6 = vsel %vm258_vm3, %v355_v51, %v351_v1  ;;  %v405_v15 = vsel %vm404_vm7, %v323_v63, %v403_v11  ;;  %vm978_vm7 = vcmask 0  }
  0xc3   :  { %v360_v56 = vrot.slane %v188_v34, %v1378_v43  ;;  %v407_v20 = vsel %vm406_vm8, %v342_v0, %v405_v15  ;;  %v567_v34 = vld [vmem:[%s1564_s2 + $0x8] sm:$0xff]  ;;  %vm975_vm8 = vcmask 261248  }
  0xc4   :  { %v154_v30 = vpop.xlane.xlu1 %153  ;;  %v369_v52 = vrot.slane %v190_v38, %v1374_v36  ;;  %v571_v38 = vld [vmem:[%s1563_s3 + $0x18] sm:$0xff] }
  0xc5   :  { %v148_v31 = vpop.xlane.xlu0 %147  ;;  %v193_v57 = vmul.f32 0.015625, %v154_v30  ;;  %v361_v12 = vsel %vm265_vm4, %v360_v56, %v356_v6  ;;  %v1100_v24 = vpack.c.bf16 %v571_v38, %v570_v23  ;;  %v1156_v23 = vmov 0  }
  0xc6   :  { %v191_v41 = vmul.f32 0.015625, %v148_v31  ;;  %v370_v8 = vsel %vm251_vm2, %v369_v52, %v365_v61  ;;  %v409_v26 = vsel %vm408_vm9, %v361_v12, %v407_v20  ;;  %v568_v31 = vld [vmem:[%s1563_s3] sm:$0xff]  ;;  %v1108_v61 = vpack.c.bf16 %v665_v60, %v664_v59  ;;  %1135 = vset.pattern.permute.xlu1 %v1156_v23  ;;  %1136 = vset.pattern.permute.xlu0 %v1156_v23 }
  0xc7   :  { %v384_v13 = vrot.slane %v193_v57, %v1370_v32  ;;  %v1096_v37 = vpack.c.bf16 %v569_v35, %v568_v31  ;;  %vm981_vm9 = vcmask 8200  }
  0xc8   :  { %v151_v33 = vpop.xlane.xlu1 %150  ;;  %v374_v58 = vrot.slane %v191_v41, %v1376_v39  ;;  %v809_v41 = vadd.f32 %v567_v34, %v566_v40 }
  0xc9   :  { %v157_v50 = vpop.xlane.xlu0 %156  ;;  %v192_v53 = vmul.f32 0.015625, %v151_v33  ;;  %1097 = vmatprep.subr.bf16.mxu1 %v1096_v37 }
  0xca   :  { %v194_v54 = vmul.f32 0.015625, %v157_v50  ;;  %v375_v14 = vsel %vm258_vm3, %v374_v58, %v370_v8  ;;  %1099 = vmatpush3.bf16.msra.mxu1 %v1096_v37  ;;  %v810_v27 = vmul.f32 0.5, %v809_v41 }
  0xcb   :  { %v379_v62 = vrot.slane %v192_v53, %v1378_v43  ;;  %1101 = vmatprep.subr.bf16.mxu1 %v1100_v24  ;;  %v662_v53 = vld [vmem:[%s1566_s5] sm:$0xff] }
  0xcc   :  { %v388_v2 = vrot.slane %v194_v54, %v1374_v36  ;;  %v163_v5 = vpop.xlane.xlu1 %162  ;;  %v663_v54 = vld [vmem:[%s1566_s5 + $0x8] sm:$0xff] }
  0xcd   :  { %v160_v4 = vpop.xlane.xlu0 %159  ;;  %v196_v10 = vmul.f32 0.015625, %v163_v5  ;;  %v380_v36 = vsel %vm265_vm4, %v379_v62, %v375_v14  ;;  %v1104_v57 = vpack.c.bf16 %v663_v54, %v662_v53  ;;  %v1001_v14 = vld [vmem:[%s1568_s6] ss:$0 sm:$0xff] }
  0xce   :  { %v195_v9 = vmul.f32 0.015625, %v160_v4  ;;  %v389_v22 = vsel %vm251_vm2, %v388_v2, %v384_v13  ;;  %v411_v21 = vsel %vm410_vm10, %v380_v36, %v409_v26  ;;  %1103 = vmatpush3.bf16.msra.mxu1 %v1100_v24 }
  0xcf   :  { %v398_v19 = vrot.slane %v196_v10, %v1378_v43  ;;  %1112 = vmatprep.subr.bf16.mxu1 %v1153_v3  ;;  %1105 = vmatprep.subr.bf16.mxu0 %v1104_v57 }
  0xd0   :  { %v393_v17 = vrot.slane %v195_v9, %v1376_v39  ;;  %v995_v39 = vld [vmem:[%s1562_s8] ss:$0 sm:$0xff] }
  0xd1   :  { %1055 = vmatmul.mubr.msk.f32.vlgmr.msra.gmra.mrb[0].mxu1 %vm414_vm12, %v567_v34 }
  0xd2   :  { %v394_v16 = vsel %vm258_vm3, %v393_v17, %v389_v22  ;;  %1114 = vmatpush3.bf16.msra.mxu1 %v1096_v37  ;;  %1076 = vmatprep.mubr.msk.f32.mxu1 %vm1154_vm1, %v1155_v7 }
  0xd3   :  { %v399_v32 = vsel %vm265_vm4, %v398_v19, %v394_v16  ;;  %1115 = vmatprep.subr.bf16.mxu1 %v1153_v3 }
  0xd4   :  { %v413_v28 = vsel %vm412_vm11, %v399_v32, %v411_v21 }
  0xd5   :  { %1044 = vmatmul.mubr.msk.f32.vlgmr.msra.gmra.mrb[0].mxu0 %vm414_vm12, %v413_v28 }
  0xd6   :  { %1117 = vmatpush3.bf16.msra.mxu1 %v1100_v24  ;;  %1107 = vmatpush3.bf16.msra.mxu0 %v1104_v57 }
  0xd7   :  { %1109 = vmatprep.subr.bf16.mxu0 %v1108_v61 }
  0xd9   :  { %1077 = vmatmul.mubr.msk.f32.vlgmr.msra.gmra.mrb[2].mxu1 %vm414_vm12, %v810_v27 }
  0xda   :  { %1111 = vmatpush3.bf16.msra.mxu0 %v1108_v61 }
  0xdb   :  { %1118 = vmatprep.subr.bf16.mxu0 %v1153_v3 }
 0x1a4   :  { %v1056_v52 = vpop.f32.mrb[0].mxu1 }
 0x1a5   :  { %v651_v56 = vpop.f32.mrb[1].mxu1  ;;  %v657_v62 = vadd.f32 %v1056_v52, %v998_v55 }
 0x1a6   :  { %v652_v58 = vadd.f32 %v998_v55, %v651_v56 }
 0x1a7   :  { %v661_v0 = vmax.f32 %v657_v62, 0.0 }
 0x1a8   :  { %v483_v43 = vpop.f32.mrb[0].mxu0  ;;  %v660_v63 = vmax.f32 %v652_v58, 0.0 }
 0x1a9   :  { %v484_v18 = vadd.f32 %v995_v39, %v483_v43  ;;  %v1045_v29 = vpop.f32.mrb[1].mxu0 }
 0x1aa   :  { %1065 = vmatprep.mubr.msk.f32.mxu0 %vm414_vm12, %v660_v63 }
 0x1ab   :  { %v488_v30 = vsel %vm487_vm13, %v484_v18, -inf  ;;  %1066 = vmatmul.mubr.msk.f32.vlgmr.msra.gmra.mrb[2].mxu0 %vm414_vm12, %v661_v0 }
 0x1ac   :  { %489 = vmax.xlane.f32.xlu0 %v488_v30  ;;  %1120 = vmatpush3.bf16.msra.mxu0 %v1104_v57  ;;  %v880_v8 = vpop.f32.mrb[2].mxu1 }
 0x1ad   :  { %1087 = vmatprep.mubr.msk.f32.mxu0 %vm1154_vm1, %v1155_v7  ;;  %1121 = vmatprep.subr.bf16.mxu0 %v1153_v3  ;;  %v881_v9 = vadd.f32 %v998_v55, %v880_v8  ;;  %v1078_v10 = vpop.f32.mrb[3].mxu1 }
 0x1af   :  { %v884_v11 = vmax.f32 %v881_v9, 0.0 }
 0x1b0   :  { %1123 = vmatpush3.bf16.msra.mxu0 %v1108_v61 }
 0x1b3   :  { %1088 = vmatmul.mubr.msk.f32.vlgmr.msra.gmra.mrb[4].mxu0 %vm414_vm12, %v884_v11 }
 0x239   :  { %v490_v42 = vpop.xlane.xlu0 %489 }
 0x23a   :  { %v491_v44 = vsub.f32 %v484_v18, %v490_v42 }
 0x23c   :  { %v492_v45 = vmul.f32 1.442695, %v491_v44 }
 0x23e   :  { %1137 = vpow2.f32 %v492_v45 }
 0x248   :  { %v1138_v46 = vpop.eup %1137 }
 0x249   :  { %v494_v47 = vsel %vm487_vm13, %v1138_v46, 0.0 }
 0x24a   :  { %495 = vadd.xlane.f32.xlu1 %v494_v47 }
 0x27e   :  { %v1067_v12 = vpop.f32.mrb[2].mxu0 }
 0x27f   :  { %v745_v13 = vpop.f32.mrb[3].mxu0  ;;  %v751_v43 = vadd.f32 %v1067_v12, %v1001_v14 }
 0x280   :  { %v746_v17 = vadd.f32 %v1001_v14, %v745_v13 }
 0x281   :  { %v757_v30 = vsel %vm487_vm13, %v751_v43, -inf }
 0x282   :  { %v754_v20 = vsel %vm487_vm13, %v746_v17, -inf }
 0x286   :  { %v954_v22 = vpop.f32.mrb[4].mxu0 }
 0x287   :  { %v1089_v16 = vpop.f32.mrb[5].mxu0  ;;  %v955_v31 = vadd.f32 %v1001_v14, %v954_v22 }
 0x289   :  { %v958_v35 = vsel %vm487_vm13, %v955_v31, -inf }
 0x2d7   :  { %v496_v48 = vpop.xlane.xlu1 %495 }
 0x2d8   :  { %1139 = vlog2.f32 %v496_v48 }
 0x2e2   :  { %v1140_v49 = vpop.eup %1139 }
 0x2e3   :  { %v498_v33 = vmul.f32 0.6931472, %v1140_v49 }
 0x2e5   :  { %v1475_v50 = vsub.f32 %v491_v44, %v498_v33 }
 0x2e7   :  { %v520_v51 = vsel %vm487_vm13, %v1475_v50, -inf  ;;  %970 = vst.msk [vmem:[%s1565_s9] sm:$0xff] %vm487_vm13, %v1475_v50 }
 0x2e8   :  { %521 = vmax.xlane.f32.xlu0 %v520_v51  ;;  %v500_v51 = vld [vmem:[%s1570_s1] sm:$0xff] }
 0x375   :  { %v522_v1 = vpop.xlane.xlu0 %521 }
 0x376   :  { %vm523_vm14 = vcmp.ge.f32.partialorder %v1475_v50, %v522_v1 }
 0x377   :  { %v524_v2 = vsel %vm523_vm14, %v1364_v25, 16 }
 0x378   :  { %v525_v4 = vsel %vm487_vm13, %v524_v2, 2147483647 }
 0x379   :  { %v527_v5 = vshra.s32 %v525_v4, 16  ;;  %v526_v3 = vand.u32 65535, %v525_v4 }
 0x37b   :  { %v529_v6 = vcvt.s32.f32 %v527_v5  ;;  %v528_v36 = vcvt.s32.f32 %v526_v3 }
 0x37d   :  { %530 = vmin.xlane.f32.xlu1 %v529_v6 }
 0x40a   :  { %v531_v15 = vpop.xlane.xlu1 %530 }
 0x40b   :  { %vm532_vm15 = vcmp.eq.f32.partialorder %v529_v6, %v531_v15  ;;  %v537_v26 = vcvt.f32.s32 %v531_v15 }
 0x40c   :  { %v533_v19 = vsel %vm532_vm15, %v528_v36, inf }
 0x40d   :  { %534 = vmin.xlane.f32.xlu0 %v533_v19  ;;  %v538_v21 = vshll.u32 %v537_v26, 16 }
 0x411   :  { %755 = vmax.xlane.f32.xlu0 %v754_v20 }
 0x49a   :  { %v535_v32 = vpop.xlane.xlu0 %534 }
 0x49b   :  { %v536_v28 = vcvt.f32.s32 %v535_v32 }
 0x49d   :  { %v1513_v39 = vadd.s32 %v538_v21, %v536_v28 }
 0x49e   :  { %v756_v37 = vpop.xlane.xlu0 %755 }
 0x49f   :  { %541 = vst.msk [vmem:[%s1569_s10] sm:$0xff] %vm540_vm0, %v1513_v39  ;;  %vm542_vm1 = vcmp.eq.s32.totalorder %v1364_v25, %v1513_v39  ;;  %v760_v38 = vsub.f32 %v746_v17, %v756_v37 }
 0x4a0   :  { %v543_v18 = vsel %vm542_vm1, -inf, %v1475_v50  ;;  %v1004_v6 = vsel %vm542_vm1, 1.0, %v1155_v7 }
 0x4a1   :  { %v544_v29 = vsel %vm487_vm13, %v543_v18, -inf  ;;  %v762_v40 = vmul.f32 1.442695, %v760_v38 }
 0x4a2   :  { %545 = vmax.xlane.f32.xlu1 %v544_v29 }
 0x4a3   :  { %1141 = vpow2.f32 %v762_v40 }
 0x4a6   :  { %758 = vmax.xlane.f32.xlu1 %v757_v30 }
 0x4aa   :  { %959 = vmax.xlane.f32.xlu1 %v958_v35 }
 0x4ad   :  { %v1142_v47 = vpop.eup %1141 }
 0x4ae   :  { %v766_v48 = vsel %vm487_vm13, %v1142_v47, 0.0 }
 0x52f   :  { %v546_v24 = vpop.xlane.xlu1 %545 }
 0x530   :  { %vm547_vm2 = vcmp.ge.f32.partialorder %v543_v18, %v546_v24 }
 0x531   :  { %v548_v34 = vsel %vm547_vm2, %v1364_v25, 16 }
 0x532   :  { %v549_v41 = vsel %vm487_vm13, %v548_v34, 2147483647 }
 0x533   :  { %v759_v27 = vpop.xlane.xlu1 %758  ;;  %v551_v42 = vshra.s32 %v549_v41, 16  ;;  %v550_v55 = vand.u32 65535, %v549_v41 }
 0x534   :  { %v761_v44 = vsub.f32 %v751_v43, %v759_v27 }
 0x535   :  { %v553_v45 = vcvt.s32.f32 %v551_v42  ;;  %v552_v57 = vcvt.s32.f32 %v550_v55 }
 0x536   :  { %v764_v46 = vmul.f32 1.442695, %v761_v44 }
 0x537   :  { %554 = vmin.xlane.f32.xlu0 %v553_v45  ;;  %v960_v52 = vpop.xlane.xlu1 %959 }
 0x538   :  { %1143 = vpow2.f32 %v764_v46  ;;  %v961_v53 = vsub.f32 %v955_v31, %v960_v52 }
 0x53a   :  { %v962_v54 = vmul.f32 1.442695, %v961_v53 }
 0x53b   :  { %767 = vadd.xlane.f32.xlu0 %v766_v48 }
 0x53c   :  { %1145 = vpow2.f32 %v962_v54 }
 0x542   :  { %v1144_v49 = vpop.eup %1143 }
 0x543   :  { %v769_v33 = vsel %vm487_vm13, %v1144_v49, 0.0 }
 0x544   :  { %770 = vadd.xlane.f32.xlu1 %v769_v33 }
 0x546   :  { %v1146_v59 = vpop.eup %1145 }
 0x547   :  { %v964_v61 = vsel %vm487_vm13, %v1146_v59, 0.0 }
 0x555   :  { %502 = vperm.xlu1 %1135, %v500_v51  }
 0x5c4   :  { %v555_v56 = vpop.xlane.xlu0 %554 }
 0x5c5   :  { %vm556_vm3 = vcmp.eq.f32.partialorder %v553_v45, %v555_v56  ;;  %v561_v11 = vcvt.f32.s32 %v555_v56 }
 0x5c6   :  { %v557_v58 = vsel %vm556_vm3, %v552_v57, inf }
 0x5c7   :  { %558 = vmin.xlane.f32.xlu0 %v557_v58  ;;  %v562_v3 = vshll.u32 %v561_v11, 16 }
 0x5c8   :  { %v768_v60 = vpop.xlane.xlu0 %767 }
 0x5c9   :  { %1147 = vlog2.f32 %v768_v60 }
 0x5cb   :  { %965 = vadd.xlane.f32.xlu0 %v964_v61 }
 0x5d1   :  { %v771_v62 = vpop.xlane.xlu1 %770 }
 0x5d2   :  { %1149 = vlog2.f32 %v771_v62 }
 0x5d3   :  { %v1148_v63 = vpop.eup %1147 }
 0x5d4   :  { %v773_v0 = vmul.f32 0.6931472, %v1148_v63 }
 0x5d5   :  { %v503_v1 = vpop.permute.xlu1 %502 }
 0x5d6   :  { %vm504_vm4 = vcmp.eq.s32.totalorder %v1364_v25, %v503_v1  ;;  %v776_v2 = vsub.f32 %v760_v38, %v773_v0 }
 0x5d7   :  { %v997_v4 = vsel %vm504_vm4, 1.0, %v1155_v7 }
 0x5d8   :  { %v507_v5 = vmul.f32 %v997_v4, %v1475_v50  ;;  %v780_v9 = vmul.f32 %v1004_v6, %v776_v2 }
 0x5da   :  { %v508_v8 = vsel %vm487_vm13, %v507_v5, 0.0  ;;  %v781_v10 = vsel %vm487_vm13, %v780_v9, 0.0 }
 0x5db   :  { %509 = vadd.xlane.f32.xlu0 %v508_v8 }
 0x5dc   :  { %v1150_v12 = vpop.eup %1149 }
 0x5dd   :  { %v775_v14 = vmul.f32 0.6931472, %v1150_v12 }
 0x5df   :  { %782 = vadd.xlane.f32.xlu0 %v781_v10  ;;  %v777_v17 = vsub.f32 %v761_v44, %v775_v14 }
 0x654   :  { %v559_v13 = vpop.xlane.xlu0 %558 }
 0x655   :  { %v560_v15 = vcvt.f32.s32 %v559_v13 }
 0x657   :  { %v563_v50 = vadd.s32 %v562_v3, %v560_v15 }
 0x658   :  { %v966_v36 = vpop.xlane.xlu0 %965 }
 0x659   :  { %565 = vst.msk [vmem:[%s1569_s10] sm:$0xff] %vm564_vm5, %v563_v50  ;;  %1151 = vlog2.f32 %v966_v36  ;;  %vm793_vm6 = vcmp.eq.s32.totalorder %v1364_v25, %v563_v50 }
 0x65a   :  { %v1005_v19 = vsel %vm793_vm6, 1.0, %v1155_v7 }
 0x65b   :  { %v796_v20 = vmul.f32 %v1005_v19, %v777_v17 }
 0x65d   :  { %v797_v22 = vsel %vm487_vm13, %v796_v20, 0.0 }
 0x65e   :  { %798 = vadd.xlane.f32.xlu0 %v797_v22 }
 0x663   :  { %v1152_v16 = vpop.eup %1151 }
 0x664   :  { %v968_v26 = vmul.f32 0.6931472, %v1152_v16 }
 0x666   :  { %v969_v32 = vsub.f32 %v961_v53, %v968_v26 }
 0x668   :  { %972 = vrot.lane.b32.xlu1 %v969_v32, %s1157_s17  ;;  %v510_v21 = vpop.xlane.xlu0 %509 }
 0x669   :  { %v511_v28 = vrot.slane %v510_v21, 4 }
 0x66b   :  { %v512_v39 = vadd.f32 %v511_v28, %v510_v21 }
 0x66c   :  { %v783_v43 = vpop.xlane.xlu0 %782 }
 0x66d   :  { %v513_v18 = vrot.slane %v512_v39, 2  ;;  %v784_v29 = vrot.slane %v783_v43, 4 }
 0x66f   :  { %v785_v30 = vadd.f32 %v784_v29, %v783_v43  ;;  %v514_v31 = vadd.f32 %v513_v18, %v512_v39 }
 0x671   :  { %v786_v25 = vrot.slane %v785_v30, 2  ;;  %v515_v35 = vrot.slane %v514_v31, 1 }
 0x673   :  { %v516_v7 = vadd.f32 %v515_v35, %v514_v31  ;;  %v787_v23 = vadd.f32 %v786_v25, %v785_v30 }
 0x675   :  { %1124 = vpush %v516_v7  ;;  %v788_v37 = vrot.slane %v787_v23, 1 }
 0x677   :  { %v789_v38 = vadd.f32 %v788_v37, %v787_v23 }
 0x679   :  { %1126 = vpush %v789_v38 }
 0x6a6   :  { %s1125_s10 = spop %1124 }
 0x6a7   :  { %s518_s18 = ssub.f32 0.0, %s1125_s10 }
 0x6a9   :  { %s519_s8 = smul.f32 0.125, %s518_s18 }
 0x6aa   :  { %s1127_s23 = spop %1126 }
 0x6ab   :  { %v977_v40 = vstv %s519_s8  ;;  %s791_s2 = smul.f32 0.125, %s1127_s23 }
 0x6ac   :  { %979 = vst.msk [vmem:[%s1571_s11] sm:$0x1] %vm978_vm7, %v977_v40 }
 0x6ad   :  { %s792_s24 = ssub.f32 %s519_s8, %s791_s2 }
 0x6da   :  { %v973_v24 = vpop.permute.xlu1 %972 }
 0x6db   :  { %976 = vst.msk [vmem:[%s1565_s9] sm:$0xff] %vm975_vm8, %v973_v24 }
 0x6eb   :  { %v799_v34 = vpop.xlane.xlu0 %798 }
 0x6ec   :  { %v800_v41 = vrot.slane %v799_v34, 4 }
 0x6ee   :  { %v801_v27 = vadd.f32 %v800_v41, %v799_v34 }
 0x6f0   :  { %v802_v42 = vrot.slane %v801_v27, 2 }
 0x6f2   :  { %v803_v44 = vadd.f32 %v802_v42, %v801_v27 }
 0x6f4   :  { %v804_v45 = vrot.slane %v803_v44, 1 }
 0x6f6   :  { %v805_v46 = vadd.f32 %v804_v45, %v803_v44 }
 0x6f8   :  { %1128 = vpush %v805_v46 }
 0x729   :  { %s1129_s3 = spop %1128 }
 0x72a   :  { %s807_s25 = smul.f32 0.125, %s1129_s3 }
 0x72c   :  { %s808_s26 = ssub.f32 %s792_s24, %s807_s25 }
 0x72e   :  { %v980_v47 = vstv %s808_s26 }
 0x72f   :  { %982 = vst.msk [vmem:[%s1571_s11] sm:$0x1] %vm981_vm9, %v980_v47 }

</bundles_post_ra>
